<compile_context>
chip_gen: v5e
topology: v5e:2x2
jax: 0.10.0
libtpu: 0.0.40
codegen_flags: <defaults>
</compile_context>

<pallas_src>
import jax
import jax.numpy as jnp
from jax.experimental import pallas as pl


def _concat_slice_concat_kernel(a_ref, b_ref, c_ref, o_ref):
    """o = [v7 | v7[:, 1:]] with v7 = [a | b | c]  (exact width 2C-1)."""
    a = a_ref[...]
    b = b_ref[...]
    c = c_ref[...]

    # Build v7 exactly once in registers (two lane joins total); the second
    # copy is a single lane-shift of the already-assembled v7 rather than a
    # re-decomposition of a[1:], b, c at new misaligned offsets.
    v7 = jnp.concatenate([a, b, c], axis=1)          # (n, C)

    # One store of the exact-width output row; only the final vreg is masked.
    o_ref[...] = jnp.concatenate([v7, v7[:, 1:]], axis=1)   # (n, 2C-1)


def model_forward(x11, x12, x13):
    """x11: (N,48,1,1), x12: (N,120,1,1), x13: (N,224,1,1) -> (N,783,1,1)."""
    n = x11.shape[0]
    a = x11.reshape(n, -1)  # (N, 48)
    b = x12.reshape(n, -1)  # (N, 120)
    c = x13.reshape(n, -1)  # (N, 224)

    ca, cb, cc = a.shape[1], b.shape[1], c.shape[1]
    C = ca + cb + cc                 # 392
    out_c = 2 * C - 1                # 783

    itemsize = jnp.dtype(x11.dtype).itemsize
    bytes_accessed = (C + out_c) * itemsize * n

    out2d = pl.pallas_call(
        _concat_slice_concat_kernel,
        out_shape=jax.ShapeDtypeStruct((n, out_c), x11.dtype),
        in_specs=[
            # Block widths equal the full array dims -> exempt from (8,128).
            pl.BlockSpec((n, ca), lambda: (0, 0)),
            pl.BlockSpec((n, cb), lambda: (0, 0)),
            pl.BlockSpec((n, cc), lambda: (0, 0)),
        ],
        out_specs=pl.BlockSpec((n, out_c), lambda: (0, 0)),
        cost_estimate=pl.CostEstimate(
            flops=0, transcendentals=0, bytes_accessed=bytes_accessed
        ),
    )(a, b, c)

    # Restore NCHW (H = W = 1); this is a metadata-only reshape.
    return out2d.reshape(n, out_c, 1, 1)


def _reference_forward(x11, x12, x13):
    v7 = jnp.concatenate([x11, x12, x13], axis=1)
    v9 = v7[:, 1:]
    return jnp.concatenate([v7, v9], axis=1)


if __name__ == "__main__":
    key = jax.random.PRNGKey(0)
    k1, k2, k3 = jax.random.split(key, 3)
    x11 = jax.random.normal(k1, (1, 48, 1, 1), dtype=jnp.float32)
    x12 = jax.random.normal(k2, (1, 120, 1, 1), dtype=jnp.float32)
    x13 = jax.random.normal(k3, (1, 224, 1, 1), dtype=jnp.float32)

    out = jax.block_until_ready(model_forward(x11, x12, x13))

    ref = _reference_forward(x11, x12, x13)
    assert out.shape == (1, 783, 1, 1), out.shape
    assert jnp.array_equal(out, ref), "Pallas output does not match reference"

    print("KERNEL_OK")
</pallas_src>

<mosaic_0001>
module attributes {stable_mosaic.version = 11 : i64} {
  func.func @_concat_slice_concat_kernel(%arg0: memref<1x48xf32, #tpu.memory_space<vmem>>, %arg1: memref<1x120xf32, #tpu.memory_space<vmem>>, %arg2: memref<1x224xf32, #tpu.memory_space<vmem>>, %arg3: memref<1x783xf32, #tpu.memory_space<vmem>>) attributes {dimension_semantics = [], scalar_prefetch = 0 : i64, scratch_operands = 0 : i64, tpu.core_type = #tpu.core_type<tc>} {
    %c0 = arith.constant 0 : index
    %c0_0 = arith.constant 0 : index
    %0 = vector.load %arg0[%c0, %c0_0] : memref<1x48xf32, #tpu.memory_space<vmem>>, vector<1x48xf32>
    %c0_1 = arith.constant 0 : index
    %c0_2 = arith.constant 0 : index
    %1 = vector.load %arg1[%c0_1, %c0_2] : memref<1x120xf32, #tpu.memory_space<vmem>>, vector<1x120xf32>
    %c0_3 = arith.constant 0 : index
    %c0_4 = arith.constant 0 : index
    %2 = vector.load %arg2[%c0_3, %c0_4] : memref<1x224xf32, #tpu.memory_space<vmem>>, vector<1x224xf32>
    %3 = tpu.concatenate %0, %1, %2 in 1 : vector<1x48xf32>, vector<1x120xf32>, vector<1x224xf32> -> vector<1x392xf32>
    %4 = vector.extract_strided_slice %3 {offsets = [0, 1], sizes = [1, 391], strides = [1, 1]} : vector<1x392xf32> to vector<1x391xf32>
    %5 = tpu.concatenate %3, %4 in 1 : vector<1x392xf32>, vector<1x391xf32> -> vector<1x783xf32>
    %c0_5 = arith.constant 0 : index
    %c0_6 = arith.constant 0 : index
    %6 = vector.load %arg3[%c0_5, %c0_6] : memref<1x783xf32, #tpu.memory_space<vmem>>, vector<1x783xf32>
    tpu.vector_store %arg3[%c0_5, %c0_6], %5 {strides = array<i32>} : memref<1x783xf32, #tpu.memory_space<vmem>>, vector<1x783xf32>,
    return
  }
}

</mosaic_0001>

<bundles_post_ra>
// kernel: tpu_custom_call.1
= control target key start
LH: loop header
LB: loop body
LE: loop exit
PB: predicated region body
PF: predicated region fallthrough
CT: control target
= control target key end

     0   :  { %8 = vsyncpa [#allocation3], 0  ;;  %s290_s0 = inlined_call_operand.hbm [shape: f32[1,48], index: 0, kind: input, shape index: {}]   ;;  %s291_s1 = inlined_call_operand.hbm [shape: f32[1,120], index: 1, kind: input, shape index: {}]   ;;  %s292_s2 = inlined_call_operand.hbm [shape: f32[1,224], index: 2, kind: input, shape index: {}]   ;;  %s293_s3 = inlined_call_operand.hbm [shape: f32[1,783], index: 3, kind: output, shape index: {}]  }
   0x1   :  { %9 = vsyncpa [#allocation6], 0  ;;  %s27_s14 = sshll.u32 %s291_s1, 4  ;;  %s28_s14 = int_to_ptr.hbm [resolvable:$true] %s27_s14 }
   0x2   :  { %10 = vsyncpa [#allocation4], 0  ;;  %s248_s15 = smov [#allocation5]   ;;  %s16_s19 = sshll.u32 %s290_s0, 4  ;;  %s17_s19 = int_to_ptr.hbm [resolvable:$true] %s16_s19 }
   0x3   :  { %s29_s16 = sshll.u32 %s248_s15, 4  ;;  %s249_s20 = smov [#allocation2]   ;;  %s30_s16 = int_to_ptr.vmem [resolvable:$true] %s29_s16 }
   0x4   :  { %32 = dma.hbm_to_vmem [thread:$0]  %s28_s14, 16, %s30_s16, [#allocation6]  }
   0x5   :  { %s18_s21 = sshll.u32 %s249_s20, 4  ;;  %s38_s24 = sshll.u32 %s292_s2, 4  ;;  %s19_s21 = int_to_ptr.vmem [resolvable:$true] %s18_s21  ;;  %s39_s24 = int_to_ptr.hbm [resolvable:$true] %s38_s24 }
   0x6   :  { %21 = dma.hbm_to_vmem [thread:$0]  %s17_s19, 16, %s19_s21, [#allocation3]  }
   0x7   :  { %s250_s1 = smov [#allocation7]  }
   0x8   :  { %s40_s25 = sshll.u32 %s250_s1, 4  ;;  %s41_s25 = int_to_ptr.vmem [resolvable:$true] %s40_s25 }
   0x9   :  { %43 = dma.hbm_to_vmem [thread:$0]  %s39_s24, 32, %s41_s25, [#allocation6]  }
   0xa   :  { %242 = dma.done.wait [#allocation3], 16  }
   0xb   :  { %243 = vsyncadd [#allocation3], 4294967280 }
   0xc   :  { %244 = dma.done.wait [#allocation6], 48  }
   0xd   :  { %245 = vsyncadd [#allocation6], 4294967248  ;;  %v58_v0 = vld [vmem:[#allocation7] sm:$0x3]  ;;  %v145_v1 = vld [vmem:[#allocation5] ss:$0 sm:$0xff]  ;;  %v115_v19 = vlaneseq }
   0xe   :  { %v66_v2 = vperm.slane %v58_v0, 1  ;;  %s251_s0 = smov 48   ;;  %s252_s26 = smov 40   ;;  %v65_v3 = vperm.slane %v58_v0, 0  ;;  %v56_v4 = vld [vmem:[#allocation2] sm:$0x1] }
   0xf   :  { %61 = vrot.lane.b32.xlu0 %v145_v1, %s251_s0  ;;  %vm75_vm0 = vcmask 392192   ;;  %s253_s2 = smov 7   ;;  %vm71_vm1 = vcmask 326656   ;;  %vm102_vm2 = vcmask 1040384   ;;  %vm88_vm3 = vcmask 56320   ;;  %s254_s27 = smov [#allocation8]  }
  0x10   :  { %69 = vrot.lane.b32.xlu1 %v66_v2, %s252_s26  ;;  %vm93_vm4 = vcmask 64512   ;;  %vm104_vm5 = vcmask 1042434   ;;  %vm108_vm6 = vcmask 1044484   ;;  %vm106_vm7 = vcmask 1041408   ;;  %s125_s28 = sshll.u32 %s254_s27, 4  ;;  %s127_s4 = sshll.u32 %s293_s3, 4  ;;  %s126_s28 = int_to_ptr.vmem [resolvable:$true] %s125_s28  ;;  %s128_s4 = int_to_ptr.hbm [resolvable:$true] %s127_s4 }
  0x11   :  { %vm110_vm8 = vcmask 1045508   ;;  %vm112_vm9 = vcmask 1043456   ;;  %vm117_vm10 = vcmp.lt.s32.totalorder %v115_v19, 783 }
  0x17   :  { %67 = vrot.lane.b32.xlu0 %v65_v3, %s252_s26 }
  0x81   :  { %v62_v5 = vpop.permute.xlu0 %61 }
  0x82   :  { %v70_v6 = vpop.permute.xlu1 %69  ;;  %v76_v7 = vsel %vm75_vm0, %v56_v4, %v62_v5 }
  0x83   :  { %86 = vrot.lane.b32.xlu0 %v70_v6, %s253_s2  ;;  %80 = vrot.lane.b32.xlu1 %v76_v7, %s253_s2 }
  0x89   :  { %v68_v8 = vpop.permute.xlu0 %67 }
  0x8a   :  { %v77_v9 = vsel %vm71_vm1, %v62_v5, %v68_v8  ;;  %v72_v12 = vsel %vm71_vm1, %v68_v8, %v70_v6 }
  0x8b   :  { %82 = vrot.lane.b32.xlu2 %v77_v9, %s253_s2  ;;  %v96_v10 = vrot.slane %v77_v9, 7  ;;  %v97_v15 = vrot.slane %v72_v12, 6 }
  0x8d   :  { %v103_v11 = vsel %vm102_vm2, %v76_v7, %v96_v10 }
  0x93   :  { %84 = vrot.lane.b32.xlu2 %v72_v12, %s253_s2 }
  0xe5   :  { %v83_v13 = vpop.permute.xlu2 %82 }
  0xed   :  { %v85_v14 = vpop.permute.xlu2 %84 }
  0xee   :  { %v90_v16 = vsel %vm88_vm3, %v83_v13, %v85_v14 }
  0xef   :  { %v100_v23 = vrot.slane %v90_v16, 3 }
  0xf5   :  { %v87_v17 = vpop.permute.xlu0 %86  ;;  %v81_v18 = vpop.permute.xlu1 %80 }
  0xf6   :  { %v91_v20 = vsel %vm88_vm3, %v85_v14, %v87_v17  ;;  %v89_v21 = vsel %vm88_vm3, %v81_v18, %v83_v13  ;;  %v94_v22 = vsel %vm93_vm4, %v70_v6, %v81_v18 }
  0xf7   :  { %v101_v24 = vrot.slane %v91_v20, 2  ;;  %v98_v25 = vrot.slane %v94_v22, 5  ;;  %v99_v26 = vrot.slane %v89_v21, 4 }
  0xf9   :  { %v105_v27 = vsel %vm104_vm5, %v97_v15, %v98_v25  ;;  %v109_v28 = vsel %vm108_vm6, %v99_v26, %v100_v23 }
  0xfa   :  { %v107_v29 = vsel %vm106_vm7, %v103_v11, %v105_v27  ;;  %v111_v30 = vsel %vm110_vm8, %v109_v28, %v101_v24 }
  0xfb   :  { %v113_v31 = vsel %vm112_vm9, %v107_v29, %v111_v30 }
  0xfc   :  { %119 = vst.msk [vmem:[#allocation8] sm:$0x7f] %vm117_vm10, %v113_v31 }
  0xfd   :  { %130 = dma.vmem_to_hbm [thread:$0]  %s126_s28, 112, %s128_s4, [#allocation4]  }
  0xfe   :  { %246 = dma.done.wait [#allocation4], 112  }
  0xff   :  { %247 = vsyncadd [#allocation4], 4294967184 }
 0x100   :  { %135 = vsyncpa [#allocation3], 1 }
 0x101   :  { %136 = vsyncpa [#allocation6], 1 }
 0x102   :  { %137 = vsyncpa [#allocation4], 1 }

</bundles_post_ra>
